<compile_context>
chip_gen: v7x
topology: tpu7x:2x2x1
jax: 0.10.0
libtpu: 0.0.40
codegen_flags: <defaults>
</compile_context>

<pallas_src>
import jax
import jax.numpy as jnp
from jax.experimental import pallas as pl
from jax.experimental.pallas import tpu as pltpu


def _round_up(a, b):
    return -(-a // b) * b


def _feature_tile(f, tile_f):
    assert tile_f % 128 == 0
    return max(128, min(tile_f, _round_up(f, 128)))


def medusa_resblock_kernel(xk_ref, xr_ref, w_ref, b_ref, o_ref, acc_ref):
    # xk_ref : (tm, tk) bf16     x view for the matmul (K-tiled)
    # xr_ref : (tm, tn) x.dtype  x view for the residual (N-tiled)
    # w_ref  : (tn, tk) bf16     weight tile, PyTorch [H, D] layout
    # b_ref  : (1, tn)  f32      bias tile
    # o_ref  : (tm, tn)          output tile
    # acc_ref: (tm, tn) f32      VMEM accumulator, resident across K
    k = pl.program_id(2)

    @pl.when(k == 0)
    def _():
        acc_ref[...] = jnp.zeros_like(acc_ref)

    # bf16 MXU matmul with f32 accumulation; contract dim 1 of both operands so
    # the weight needs no transpose anywhere (not even at load time).
    acc_ref[...] += jax.lax.dot_general(
        xk_ref[...], w_ref[...],
        dimension_numbers=(((1,), (1,)), ((), ())),
        preferred_element_type=jnp.float32)

    @pl.when(k == pl.num_programs(2) - 1)
    def _():
        y = acc_ref[...] + b_ref[...]
        silu = y * jax.nn.sigmoid(y)                       # SiLU in f32 (VPU + EUP)
        o_ref[...] = (xr_ref[...].astype(jnp.float32) + silu).astype(o_ref.dtype)


def prepare_medusa_params(weight, bias, *, tile_f=512):
    """One-time (parameter-load-time) prep: bf16 cast + lane padding.

    weight: [H, D] (PyTorch nn.Linear layout), bias: [H].  Requires H == D.
    Returns (w_padded_bf16 [Fp, Fp], bias_padded_f32 [1, Fp], tf).
    """
    H, D = weight.shape
    assert H == D, "residual add requires input_size == hidden_size"
    tf = _feature_tile(D, tile_f)
    f_pad = _round_up(D, tf)
    w_p = jnp.zeros((f_pad, f_pad), jnp.bfloat16).at[:H, :D].set(
        weight.astype(jnp.bfloat16))
    b_p = jnp.zeros((1, f_pad), jnp.float32).at[0, :H].set(
        bias.astype(jnp.float32))
    return w_p, b_p, tf


def medusa_resblock(x, w_padded, b_padded, tf, *, tm=256):
    """x: [M, D]; w_padded/b_padded/tf from prepare_medusa_params.  Returns [M, D]."""
    M, D = x.shape
    f_pad = w_padded.shape[0]
    assert w_padded.shape == (f_pad, f_pad) and f_pad % tf == 0
    assert D <= f_pad

    tm_eff = max(16, min(tm, _round_up(M, 16)))   # multiple of 16 (bf16 sublanes)
    m_pad = _round_up(M, tm_eff)

    # Per-call glue in plain JAX: pad activations + make the bf16 MXU view.
    x_r = jnp.zeros((m_pad, f_pad), x.dtype).at[:M, :D].set(x)
    x_mm = x_r.astype(jnp.bfloat16)

    n_m, n_f = m_pad // tm_eff, f_pad // tf

    cost = pl.CostEstimate(
        flops=2 * m_pad * f_pad * f_pad,
        transcendentals=m_pad * f_pad,
        bytes_accessed=(x_mm.size * 2                      # bf16 matmul view
                        + x_r.size * x_r.dtype.itemsize    # residual view
                        + w_padded.size * 2                # bf16 weight stream
                        + b_padded.size * 4
                        + m_pad * f_pad * x.dtype.itemsize),
    )

    out = pl.pallas_call(
        medusa_resblock_kernel,
        out_shape=jax.ShapeDtypeStruct((m_pad, f_pad), x.dtype),
        grid_spec=pltpu.PrefetchScalarGridSpec(
            num_scalar_prefetch=0,
            grid=(n_m, n_f, n_f),                                   # (M, N, K) — K last
            in_specs=[
                pl.BlockSpec((tm_eff, tf), lambda i, n, k: (i, k)),  # x (matmul)
                pl.BlockSpec((tm_eff, tf), lambda i, n, k: (i, n)),  # x (residual)
                pl.BlockSpec((tf, tf), lambda i, n, k: (n, k)),      # weight tile
                pl.BlockSpec((1, tf), lambda i, n, k: (0, n)),       # bias tile
            ],
            out_specs=pl.BlockSpec((tm_eff, tf), lambda i, n, k: (i, n)),
            scratch_shapes=[pltpu.VMEM((tm_eff, tf), jnp.float32)],
        ),
        compiler_params=pltpu.CompilerParams(
            dimension_semantics=("parallel", "parallel", "arbitrary"),
            vmem_limit_bytes=32 * 1024 * 1024,   # safe on v5e/v6e/v7x; tiles need ~4 MiB
        ),
        cost_estimate=cost,
    )(x_mm, x_r, w_padded, b_padded)

    return out[:M, :D]


if __name__ == "__main__":
    # Small shapes consistent with the module: batch=2, seq=8, hidden=32.
    batch, seq, hidden = 2, 8, 32
    input_size = hidden_size = hidden

    key = jax.random.PRNGKey(0)
    kx, kb, kw = jax.random.split(key, 3)

    x = jax.random.normal(kx, (batch, seq, hidden), dtype=jnp.float32)

    # Parameters exactly as the module's __init__: zero weight, PyTorch-default
    # uniform bias init (deterministic here).
    weight = jnp.zeros((hidden_size, input_size), dtype=jnp.float32)
    bound = 1.0 / jnp.sqrt(jnp.float32(input_size))
    bias = jax.random.uniform(kb, (hidden_size,), minval=-bound, maxval=bound,
                              dtype=jnp.float32)

    # One-time parameter prep (hoisted out of the per-call hot path).
    w_p, b_p, tf = prepare_medusa_params(weight, bias)

    x2d = x.reshape(batch * seq, hidden)
    out = medusa_resblock(x2d, w_p, b_p, tf).reshape(batch, seq, hidden)
    jax.block_until_ready(out)

    # Reference check (module-init params: W == 0).
    lin = x @ weight.T + bias
    ref = x + lin * jax.nn.sigmoid(lin)
    assert jnp.allclose(out, ref, atol=1e-5, rtol=1e-5), "mismatch (zero-weight init)"

    # Second check with a non-zero weight so the MXU path is actually exercised
    # (bf16 matmul => looser tolerance; residual / epilogue stay f32).
    weight2 = 0.05 * jax.random.normal(kw, (hidden_size, input_size),
                                       dtype=jnp.float32)
    w_p2, b_p2, _ = prepare_medusa_params(weight2, bias)
    out2 = medusa_resblock(x2d, w_p2, b_p2, tf).reshape(batch, seq, hidden)
    jax.block_until_ready(out2)

    lin2 = x @ weight2.T + bias
    ref2 = x + lin2 * jax.nn.sigmoid(lin2)
    assert jnp.allclose(out2, ref2, atol=2e-2, rtol=2e-2), "mismatch (random weight)"

    print("KERNEL_OK")
</pallas_src>

<mosaic_0001>
module attributes {stable_mosaic.version = 11 : i64} {
  func.func @medusa_resblock_kernel(%arg0: i32, %arg1: i32, %arg2: i32, %arg3: memref<16x128xbf16, #tpu.memory_space<vmem>>, %arg4: memref<16x128xf32, #tpu.memory_space<vmem>>, %arg5: memref<128x128xbf16, #tpu.memory_space<vmem>>, %arg6: memref<1x128xf32, #tpu.memory_space<vmem>>, %arg7: memref<16x128xf32, #tpu.memory_space<vmem>>, %arg8: memref<16x128xf32, #tpu.memory_space<vmem>>) attributes {dimension_semantics = [#tpu.dimension_semantics<parallel>, #tpu.dimension_semantics<parallel>, #tpu.dimension_semantics<arbitrary>], iteration_bounds = array<i64: 1, 1, 1>, scalar_prefetch = 0 : i64, scratch_operands = 1 : i64, tpu.core_type = #tpu.core_type<tc>, window_params = [{transform_indices = @transform_0, window_bounds = array<i64: 16, 128>}, {transform_indices = @transform_1, window_bounds = array<i64: 16, 128>}, {transform_indices = @transform_2, window_bounds = array<i64: 128, 128>}, {transform_indices = @transform_3, window_bounds = array<i64: 1, 128>}, {transform_indices = @transform_4, window_bounds = array<i64: 16, 128>}]} {
    %c0_i32 = arith.constant 0 : i32
    %0 = arith.cmpi eq, %arg2, %c0_i32 : i32
    %1 = arith.extui %0 : i1 to i32
    %c0_i32_0 = arith.constant 0 : i32
    %2 = arith.cmpi ne, %1, %c0_i32_0 : i32
    scf.if %2 {
      %cst_10 = arith.constant 0.000000e+00 : f32
      %12 = vector.broadcast %cst_10 : f32 to vector<16x128xf32>
      %c0_11 = arith.constant 0 : index
      %c0_12 = arith.constant 0 : index
      %13 = vector.load %arg8[%c0_11, %c0_12] : memref<16x128xf32, #tpu.memory_space<vmem>>, vector<16x128xf32>
      tpu.vector_store %arg8[%c0_11, %c0_12], %12 {strides = array<i32>} : memref<16x128xf32, #tpu.memory_space<vmem>>, vector<16x128xf32>,
    } else {
    }
    %c0 = arith.constant 0 : index
    %c0_1 = arith.constant 0 : index
    %3 = vector.load %arg8[%c0, %c0_1] : memref<16x128xf32, #tpu.memory_space<vmem>>, vector<16x128xf32>
    %c0_2 = arith.constant 0 : index
    %c0_3 = arith.constant 0 : index
    %4 = vector.load %arg3[%c0_2, %c0_3] : memref<16x128xbf16, #tpu.memory_space<vmem>>, vector<16x128xbf16>
    %c0_4 = arith.constant 0 : index
    %c0_5 = arith.constant 0 : index
    %5 = vector.load %arg5[%c0_4, %c0_5] : memref<128x128xbf16, #tpu.memory_space<vmem>>, vector<128x128xbf16>
    %cst = arith.constant dense<0.000000e+00> : vector<16x128xf32>
    %6 = tpu.matmul %4, %5, %cst {dimension_numbers = #tpu.dot_dimension_numbers<[1], [1], [0], [0], [0, 0, 1, 0], [], []>} : vector<16x128xbf16>, vector<128x128xbf16>, vector<16x128xf32> -> vector<16x128xf32>
    %7 = arith.addf %3, %6 : vector<16x128xf32>
    %c0_6 = arith.constant 0 : index
    %c0_7 = arith.constant 0 : index
    %8 = vector.load %arg8[%c0_6, %c0_7] : memref<16x128xf32, #tpu.memory_space<vmem>>, vector<16x128xf32>
    tpu.vector_store %arg8[%c0_6, %c0_7], %7 {strides = array<i32>} : memref<16x128xf32, #tpu.memory_space<vmem>>, vector<16x128xf32>,
    %c0_i32_8 = arith.constant 0 : i32
    %9 = arith.cmpi eq, %arg2, %c0_i32_8 : i32
    %10 = arith.extui %9 : i1 to i32
    %c0_i32_9 = arith.constant 0 : i32
    %11 = arith.cmpi ne, %10, %c0_i32_9 : i32
    scf.if %11 {
      %c0_10 = arith.constant 0 : index
      %c0_11 = arith.constant 0 : index
      %12 = vector.load %arg8[%c0_10, %c0_11] : memref<16x128xf32, #tpu.memory_space<vmem>>, vector<16x128xf32>
      %c0_12 = arith.constant 0 : index
      %c0_13 = arith.constant 0 : index
      %13 = vector.load %arg6[%c0_12, %c0_13] : memref<1x128xf32, #tpu.memory_space<vmem>>, vector<1x128xf32>
      %14 = vector.broadcast %13 : vector<1x128xf32> to vector<16x128xf32>
      %15 = arith.addf %12, %14 : vector<16x128xf32>
      %16 = arith.negf %15 : vector<16x128xf32>
      %17 = math.exp %16 : vector<16x128xf32>
      %cst_14 = arith.constant 1.000000e+00 : f32
      %18 = vector.broadcast %cst_14 : f32 to vector<16x128xf32>
      %19 = arith.addf %18, %17 : vector<16x128xf32>
      %20 = arith.divf %18, %19 : vector<16x128xf32>
      %21 = arith.mulf %15, %20 : vector<16x128xf32>
      %c0_15 = arith.constant 0 : index
      %c0_16 = arith.constant 0 : index
      %22 = vector.load %arg4[%c0_15, %c0_16] : memref<16x128xf32, #tpu.memory_space<vmem>>, vector<16x128xf32>
      %23 = arith.addf %22, %21 : vector<16x128xf32>
      %c0_17 = arith.constant 0 : index
      %c0_18 = arith.constant 0 : index
      %24 = vector.load %arg7[%c0_17, %c0_18] : memref<16x128xf32, #tpu.memory_space<vmem>>, vector<16x128xf32>
      tpu.vector_store %arg7[%c0_17, %c0_18], %23 {strides = array<i32>} : memref<16x128xf32, #tpu.memory_space<vmem>>, vector<16x128xf32>,
    } else {
    }
    return
  }
  func.func @transform_0(%arg0: i32, %arg1: i32, %arg2: i32) -> (i32, i32) {
    %c0_i32 = arith.constant 0 : i32
    return %arg0, %arg2 : i32, i32
  }
  func.func @transform_1(%arg0: i32, %arg1: i32, %arg2: i32) -> (i32, i32) {
    %c0_i32 = arith.constant 0 : i32
    return %arg0, %arg1 : i32, i32
  }
  func.func @transform_2(%arg0: i32, %arg1: i32, %arg2: i32) -> (i32, i32) {
    %c0_i32 = arith.constant 0 : i32
    return %arg1, %arg2 : i32, i32
  }
  func.func @transform_3(%arg0: i32, %arg1: i32, %arg2: i32) -> (i32, i32) {
    %c0_i32 = arith.constant 0 : i32
    %c0_i32_0 = arith.constant 0 : i32
    return %c0_i32, %arg1 : i32, i32
  }
  func.func @transform_4(%arg0: i32, %arg1: i32, %arg2: i32) -> (i32, i32) {
    %c0_i32 = arith.constant 0 : i32
    return %arg0, %arg1 : i32, i32
  }
}

</mosaic_0001>

<bundles_post_ra>
// kernel: tpu_custom_call.1
= control target key start
LH: loop header
LB: loop body
LE: loop exit
PB: predicated region body
PF: predicated region fallthrough
CT: control target
= control target key end

     0   :  { %9 = vsyncpa [#allocation4], 0  ;;  %s491_s0 = inlined_call_operand.hbm [shape: bf16[16,128], index: 0, kind: input, shape index: {}]   ;;  %s492_s1 = inlined_call_operand.hbm [shape: f32[16,128], index: 1, kind: input, shape index: {}]   ;;  %s493_s2 = inlined_call_operand.hbm [shape: bf16[128,128], index: 2, kind: input, shape index: {}]   ;;  %s494_s3 = inlined_call_operand.vmem [shape: f32[1,128], index: 3, kind: input, shape index: {}]   ;;  %s495_s4 = inlined_call_operand.hbm [shape: f32[16,128], index: 4, kind: output, shape index: {}]  }
   0x1   :  { %10 = vsyncpa [#allocation7], 0 }
   0x2   :  { %11 = vsyncpa [#allocation5], 0  ;;  %s399_s15 = smov [#allocation6]   ;;  %s305_s19 = scalar_lea.hbm %s492_s1, 256 }
   0x3   :  { %s29_s16 = sshll.u32 %s399_s15, 4  ;;  %p306_p0 = scmp.ne.s32.totalorder %s492_s1, %s305_s19  ;;  %s30_s16 = int_to_ptr.vmem [resolvable:$true] %s29_s16 }
   0x4   :  { %p309_p1 = scmp.lt.u32.totalorder %s305_s19, %s492_s1 }
   0x6   :  { %p311_p2 = pnand %p309_p1, %p306_p0 }
   0x8   :  { %314 = shalt.err (!%p311_p2)
}
   0x9   :  { %s315_s24 = scalar_lea.vmem %s30_s16, 256  ;;  %p320_p4 = scmp.lt.s32.totalorder %s30_s16, %s30_s16 }
   0xa   :  { %p316_p3 = scmp.ne.s32.totalorder %s30_s16, %s315_s24  ;;  %p321_p5 = scmp.lt.s32.totalorder %s315_s24, %s315_s24 }
   0xc   :  { %p322_p6 = por %p321_p5, %p320_p4 }
   0xe   :  { %p323_p7 = pnand %p322_p6, %p316_p3 }
  0x10   :  { %326 = shalt.err (!%p323_p7)
}
  0x11   :  { %s400_s25 = smov 128   ;;  %s401_s26 = smov 8  }
  0x12   :  { %35 = dma.hbm_to_vmem [thread:$0]  %s492_s1, 256, %s30_s16, [#allocation7], %s400_s25, %s400_s25, %s401_s26  }
  0x13   :  { %s402_s29 = smov [#allocation3]   ;;  %s327_s7 = scalar_lea.hbm %s491_s0, 128 }
  0x14   :  { %s17_s30 = sshll.u32 %s402_s29, 4  ;;  %p328_p8 = scmp.ne.s32.totalorder %s491_s0, %s327_s7  ;;  %s18_s30 = int_to_ptr.vmem [resolvable:$true] %s17_s30 }
  0x15   :  { %p331_p9 = scmp.lt.u32.totalorder %s327_s7, %s491_s0 }
  0x17   :  { %p333_p10 = pnand %p331_p9, %p328_p8 }
  0x19   :  { %336 = shalt.err (!%p333_p10)
}
  0x1a   :  { %s337_s12 = scalar_lea.vmem %s18_s30, 128  ;;  %p342_p12 = scmp.lt.s32.totalorder %s18_s30, %s18_s30 }
  0x1b   :  { %p338_p11 = scmp.ne.s32.totalorder %s18_s30, %s337_s12  ;;  %p343_p13 = scmp.lt.s32.totalorder %s337_s12, %s337_s12 }
  0x1d   :  { %p344_p0 = por %p343_p13, %p342_p12 }
  0x1f   :  { %p345_p1 = pnand %p344_p0, %p338_p11 }
  0x21   :  { %348 = shalt.err (!%p345_p1)
}
  0x22   :  { %s403_s1 = smov 64   ;;  %s404_s13 = smov 4  }
  0x23   :  { %23 = dma.hbm_to_vmem [thread:$0]  %s491_s0, 128, %s18_s30, [#allocation4], %s403_s1, %s403_s1, %s404_s13  }
  0x24   :  { %s405_s16 = smov [#allocation8]   ;;  %s349_s20 = scalar_lea.hbm %s493_s2, 1024 }
  0x25   :  { %s41_s17 = sshll.u32 %s405_s16, 4  ;;  %p350_p2 = scmp.ne.s32.totalorder %s493_s2, %s349_s20  ;;  %s42_s17 = int_to_ptr.vmem [resolvable:$true] %s41_s17 }
  0x26   :  { %p353_p3 = scmp.lt.u32.totalorder %s349_s20, %s493_s2 }
  0x28   :  { %p355_p4 = pnand %p353_p3, %p350_p2 }
  0x2a   :  { %358 = shalt.err (!%p355_p4)
}
  0x2b   :  { %s359_s27 = scalar_lea.vmem %s42_s17, 1024  ;;  %p364_p6 = scmp.lt.s32.totalorder %s42_s17, %s42_s17 }
  0x2c   :  { %p360_p5 = scmp.ne.s32.totalorder %s42_s17, %s359_s27  ;;  %p365_p7 = scmp.lt.s32.totalorder %s359_s27, %s359_s27 }
  0x2e   :  { %p366_p8 = por %p365_p7, %p364_p6 }
  0x30   :  { %p367_p9 = pnand %p366_p8, %p360_p5 }
  0x32   :  { %370 = shalt.err (!%p367_p9)
}
  0x33   :  { %47 = dma.hbm_to_vmem [thread:$0]  %s493_s2, 1024, %s42_s17, [#allocation7], %s403_s1, %s403_s1, %s404_s13  }
  0x34   :  { %393 = dma.done.wait [#allocation4], 128  }
  0x35   :  { %394 = vsyncadd [#allocation4], 4294967168 }
  0x36   :  { %395 = dma.done.wait [#allocation7], 1280  }
  0x37   :  { %396 = vsyncadd [#allocation7], 4294966016  ;;  %v406_v0 = vmov 0.0   ;;  %vm407_vm0 = vmmov 0   ;;  %v288_v1 = vld [vmem:[#allocation8] sm:$0xff]   ;;  %v289_v2 = vld [vmem:[#allocation8 + $0x8] sm:$0xff]  }
  0x38   :  { %258 = vmatprep.subr.bf16.mxu0 %v406_v0  ;;  %274 = vmatprep.mubr.msk.bf16.mxu0 %vm407_vm0, %v406_v0  ;;  %v290_v3 = vld [vmem:[#allocation8 + $0x10] sm:$0xff]   ;;  %v291_v4 = vld [vmem:[#allocation8 + $0x18] sm:$0xff]   ;;  %v292_v5 = vld [vmem:[#allocation8 + $0x20] sm:$0xff]  }
  0x39   :  { %259 = vmatpush3.bf16.xpose.msra.mxu0 %v288_v1  ;;  %v293_v6 = vld [vmem:[#allocation8 + $0x28] sm:$0xff]   ;;  %v294_v7 = vld [vmem:[#allocation8 + $0x30] sm:$0xff]   ;;  %v295_v8 = vld [vmem:[#allocation8 + $0x38] sm:$0xff]  }
  0x3a   :  { %260 = vmatprep.subr.bf16.mxu0 %v406_v0  ;;  %v296_v9 = vld [vmem:[#allocation3] sm:$0xff]   ;;  %v213_v24 = vld [vmem:[#allocation6] sm:$0xff]  ;;  %v214_v27 = vld [vmem:[#allocation6 + $0x8] sm:$0xff] }
  0x3b   :  { %v246_v10 = vld [vmem:[%s494_s3] ss:$0 sm:$0xff]  ;;  %s408_s3 = smov [#allocation9]  }
  0x3c   :  { %s224_s30 = sshll.u32 %s408_s3, 4  ;;  %s225_s30 = int_to_ptr.vmem [resolvable:$true] %s224_s30 }
  0x3d   :  { %s371_s5 = scalar_lea.vmem %s225_s30, 256  ;;  %p376_p11 = scmp.lt.s32.totalorder %s225_s30, %s225_s30 }
  0x3e   :  { %p372_p10 = scmp.ne.s32.totalorder %s225_s30, %s371_s5  ;;  %p377_p12 = scmp.lt.s32.totalorder %s371_s5, %s371_s5 }
  0x40   :  { %p378_p13 = por %p377_p12, %p376_p11 }
  0x41   :  { %261 = vmatpush3.bf16.xpose.msra.mxu0 %v289_v2 }
  0x42   :  { %262 = vmatprep.subr.bf16.mxu0 %v406_v0  ;;  %p379_p0 = pnand %p378_p13, %p372_p10 }
  0x49   :  { %263 = vmatpush3.bf16.xpose.msra.mxu0 %v290_v3 }
  0x4a   :  { %264 = vmatprep.subr.bf16.mxu0 %v406_v0 }
  0x51   :  { %265 = vmatpush3.bf16.xpose.msra.mxu0 %v291_v4 }
  0x52   :  { %266 = vmatprep.subr.bf16.mxu0 %v406_v0 }
  0x59   :  { %267 = vmatpush3.bf16.xpose.msra.mxu0 %v292_v5 }
  0x5a   :  { %268 = vmatprep.subr.bf16.mxu0 %v406_v0 }
  0x61   :  { %269 = vmatpush3.bf16.xpose.msra.mxu0 %v293_v6 }
  0x62   :  { %270 = vmatprep.subr.bf16.mxu0 %v406_v0 }
  0x69   :  { %271 = vmatpush3.bf16.xpose.msra.mxu0 %v294_v7 }
  0x6a   :  { %272 = vmatprep.subr.bf16.mxu0 %v406_v0 }
  0x71   :  { %273 = vmatpush3.bf16.xpose.msra.mxu0 %v295_v8 }
  0x78   :  { %275 = vmatmul.mubr.bf16.vlgmr.msra.gmra.mrb[0].mxu0 %v296_v9 }
 0x14b   :  { %v174_v11 = vpop.f32.mrb[0].mxu0 }
 0x14c   :  { %v197_v12 = vadd.f32 %v246_v10, %v174_v11  ;;  %v276_v13 = vpop.f32.mrb[1].mxu0 }
 0x14d   :  { %v177_v14 = vpop.f32.mrb[2].mxu0 }
 0x14e   :  { %v247_v15 = vmul.f32 -1.442695, %v197_v12  ;;  %v198_v16 = vadd.f32 %v246_v10, %v177_v14  ;;  %v277_v17 = vpop.f32.mrb[3].mxu0 }
 0x150   :  { %297 = vpow2.f32 %v247_v15  ;;  %v248_v18 = vmul.f32 -1.442695, %v198_v16 }
 0x152   :  { %299 = vpow2.f32 %v248_v18 }
 0x15a   :  { %v298_v19 = vpop.eup %297 }
 0x15b   :  { %v205_v20 = vadd.f32 1.0, %v298_v19 }
 0x15c   :  { %v300_v21 = vpop.eup %299 }
 0x15d   :  { %301 = vrcp.f32 %v205_v20  ;;  %v206_v22 = vadd.f32 1.0, %v300_v21 }
 0x15f   :  { %303 = vrcp.f32 %v206_v22 }
 0x167   :  { %v302_v23 = vpop.eup %301 }
 0x168   :  { %v211_v25 = vmul.f32 %v302_v23, %v197_v12 }
 0x169   :  { %v304_v26 = vpop.eup %303 }
 0x16a   :  { %v215_v28 = vadd.f32 %v213_v24, %v211_v25  ;;  %v212_v29 = vmul.f32 %v304_v26, %v198_v16 }
 0x16c   :  { %217 = vst [vmem:[#allocation9] sm:$0xff] %v215_v28  ;;  %v216_v30 = vadd.f32 %v214_v27, %v212_v29 }
 0x16e   :  { %218 = vst [vmem:[#allocation9 + $0x8] sm:$0xff] %v216_v30 }
 0x16f   :  { %382 = shalt.err (!%p379_p0)
}
 0x170   :  { %s383_s8 = scalar_lea.hbm %s495_s4, 256 }
 0x171   :  { %p384_p1 = scmp.ne.s32.totalorder %s495_s4, %s383_s8  ;;  %p387_p2 = scmp.lt.u32.totalorder %s383_s8, %s495_s4 }
 0x173   :  { %p389_p3 = pnand %p387_p2, %p384_p1 }
 0x175   :  { %392 = shalt.err (!%p389_p3)
}
 0x176   :  { %230 = dma.vmem_to_hbm [thread:$0]  %s225_s30, 256, %s495_s4, [#allocation5], %s400_s25, %s400_s25, %s401_s26  }
 0x177   :  { %397 = dma.done.wait [#allocation5], 256  }
 0x178   :  { %398 = vsyncadd [#allocation5], 4294967040 }
 0x179   :  { %234 = vsyncpa [#allocation4], 1 }
 0x17a   :  { %235 = vsyncpa [#allocation7], 1 }
 0x17b   :  { %236 = vsyncpa [#allocation5], 1 }

</bundles_post_ra>
